<compile_context>
chip_gen: v6e
topology: v6e:2x2x1
jax: 0.10.0
libtpu: 0.0.40
codegen_flags: <defaults>
</compile_context>

<pallas_src>
import functools

import jax
import jax.numpy as jnp
from jax.experimental import pallas as pl
from jax.experimental.pallas import tpu as pltpu

# --- small synthetic config consistent with the module's forward ---
T = 2                       # train_batch_size
G = 2                       # group size (passages per query)
B = T * G                   # total pairs in the batch
S = 8                       # sequence length
BS = B * S                  # flattened token count
H = 128                     # hidden size
V = 64                      # vocab size
L = 4                       # num_hidden_layers
START_LAYER = 2             # self.start_layer
NC = L - START_LAYER + 1    # number of cutoff layers -> len(ranker_logits)


def fused_kernel(idx_ref, h0_ref, w_ref, b_ref, sw_ref, scores_ref, loss_ref):
    """Backbone MLP stack + layerwise score head + predict-token gather + loss.

    idx_ref    : VMEM [B, 1]     int32 flat predict-token row index per pair
    h0_ref     : VMEM [BS, H]    f32 embedded input tokens
    w_ref      : VMEM [L, H, H]  bf16 per-layer dense weights
    b_ref      : VMEM [L, 1, H]  f32 per-layer biases
    sw_ref     : VMEM [1, H]     f32 layerwise score head (lane-dense row)
    scores_ref : VMEM [B, NC]    f32 per-pair score for each cutoff layer
    loss_ref   : SMEM [1]        f32 CE + KD training loss
    """
    # One-hot gather matrix from the [B,1] index operand: a single broadcast
    # compare, built directly in bf16 (no serialized per-row select chain).
    col_iota = jax.lax.broadcasted_iota(jnp.int32, (B, BS), 1)
    gmat_b = (col_iota == idx_ref[...]).astype(jnp.bfloat16)        # [B, BS]

    sw_row = sw_ref[...]                                            # [1, H] f32
    lane_nc = jax.lax.broadcasted_iota(jnp.int32, (B, NC), 1)       # hoisted
    scores = jnp.zeros((B, NC), jnp.float32)                        # vreg-resident

    h_b = h0_ref[...].astype(jnp.bfloat16)                          # [BS, H] bf16
    c = 0
    for l in range(L):                                              # static layer loop
        z = jnp.dot(h_b, w_ref[l], preferred_element_type=jnp.float32) + b_ref[l]
        h = jnp.tanh(z)                                             # f32 epilogue
        h_b = h.astype(jnp.bfloat16)                                # single cast/layer:
        if (l + 1) >= START_LAYER:                                  #   gather + next LHS
            gathered = jnp.dot(gmat_b, h_b,
                               preferred_element_type=jnp.float32)  # [B, H]
            col = jnp.sum(gathered * sw_row, axis=-1, keepdims=True)  # [B, 1]
            scores = jnp.where(lane_nc == c, col, scores)           # lane-select insert
            c += 1

    scores_ref[...] = scores                                        # single store

    # ---- fused training loss from the register-resident scores ----
    # per-cutoff CE (target index 0 within each query group) + KD vs. last layer
    ce_total = jnp.float32(0.0)
    kd_total = jnp.float32(0.0)
    for t in range(T):                                              # static, T queries
        blk = scores[t * G:(t + 1) * G, :]                          # [G, NC]
        m = jnp.max(blk, axis=0, keepdims=True)                     # [1, NC]
        lse = m + jnp.log(jnp.sum(jnp.exp(blk - m), axis=0, keepdims=True))
        ce_total = ce_total + jnp.sum(lse - blk[0:1, :])            # CE, target 0
        logsm = blk - lse                                           # log_softmax [G, NC]
        tcol = blk[:, NC - 1:NC]                                    # teacher logits [G,1]
        tmx = jnp.max(tcol, axis=0, keepdims=True)
        te = jnp.exp(tcol - tmx)
        tsm = te / jnp.sum(te, axis=0, keepdims=True)               # teacher softmax
        kd_total = kd_total - jnp.sum(logsm[:, :NC - 1] * tsm)
    loss_ref[0] = (ce_total + kd_total) / T


@functools.partial(jax.jit, static_argnames=("training",))
def bi_encoder_forward(params, input_ids, attention_mask, labels, training=True):
    # --- glue (plain JAX): embedding lookup, predict-index extraction ---
    h0 = params["emb"][input_ids].reshape(BS, H).astype(jnp.float32)
    # torch.max(labels, 1) - 1, clamped so a label at position 0 gathers the
    # pair's own first token instead of leaking into the previous pair.
    # TODO(synk): PyTorch would wrap-around negative-index the same sequence;
    # clamping to 0 differs only for the degenerate predict_idx == -1 case.
    predict_idx = jnp.clip(jnp.argmax(labels, axis=1) - 1, 0, S - 1)
    flat_idx = (jnp.arange(B) * S + predict_idx).astype(jnp.int32).reshape(B, 1)
    # TODO(synk): attention_mask / position_ids are accepted but unused — the real
    # HF transformer backbone is replaced by a synthetic per-token MLP layer stack.
    del attention_mask

    w_b = params["W"].astype(jnp.bfloat16)                     # halves weight DMA bytes
    sw_row = params["sw"].reshape(1, H).astype(jnp.float32)

    cost = pl.CostEstimate(
        flops=2 * BS * H * H * L + 2 * B * BS * H * NC + 2 * B * H * NC,
        transcendentals=BS * H * L + 6 * T * G * NC,
        bytes_accessed=(flat_idx.size * 4 + h0.size * 4 + w_b.size * 2
                        + params["b"].size * 4 + sw_row.size * 4 + B * NC * 4 + 4),
    )

    # TODO(synk): at real backbone sizes (H~4k, L~40) W must NOT be a whole-array
    # VMEM operand: tile grid=(L, H//tn) (reduction axis last, L "arbitrary") with
    # (H, 512..1024) bf16 W blocks, pipeline_mode=pl.Buffered(2..3), and set
    # vmem_limit_bytes under the chip budget (mandatory within v7x's 64 MiB VMEM;
    # v6e/v5e need an explicit vmem_limit raise). Pad the token dim M to >=256 for
    # the 256-wide v6e/v7x MXUs, shard the B axis across v7x's two TensorCores via
    # a "parallel" leading grid axis, and consider int8 W on v5e/v6e only.
    scores, loss_vec = pl.pallas_call(
        fused_kernel,
        out_shape=(jax.ShapeDtypeStruct((B, NC), jnp.float32),
                   jax.ShapeDtypeStruct((1,), jnp.float32)),
        in_specs=[
            pl.BlockSpec(memory_space=pltpu.MemorySpace.VMEM),   # flat_idx [B,1]
            pl.BlockSpec(memory_space=pltpu.MemorySpace.VMEM),   # h0
            pl.BlockSpec(memory_space=pltpu.MemorySpace.VMEM),   # W (bf16)
            pl.BlockSpec(memory_space=pltpu.MemorySpace.VMEM),   # b
            pl.BlockSpec(memory_space=pltpu.MemorySpace.VMEM),   # sw
        ],
        out_specs=(pl.BlockSpec(memory_space=pltpu.MemorySpace.VMEM),
                   pl.BlockSpec(memory_space=pltpu.MemorySpace.SMEM)),
        cost_estimate=cost,
    )(flat_idx, h0, w_b, params["b"], sw_row)

    loss = loss_vec[0] if training else None
    # scores[:, c] is the ranker logit vector for cutoff layer START_LAYER + c.
    return loss, scores


def reference_forward(params, input_ids, labels):
    """Pure-JAX reference reproducing BiEncoderModel.forward semantics with the
    same bf16-matmul / f32-accumulate numerics as the kernel."""
    h = params["emb"][input_ids].astype(jnp.float32)           # [B, S, H]
    predict_idx = jnp.clip(jnp.argmax(labels, axis=1) - 1, 0, S - 1)
    sw_row = params["sw"].reshape(H).astype(jnp.float32)
    per_layer = []
    for l in range(L):
        h_b = h.astype(jnp.bfloat16)
        w_b = params["W"][l].astype(jnp.bfloat16)
        z = jnp.einsum("bsh,hk->bsk", h_b, w_b,
                       preferred_element_type=jnp.float32) + params["b"][l][0]
        h = jnp.tanh(z)
        if (l + 1) >= START_LAYER:
            gath = h[jnp.arange(B), predict_idx]                # [B, H]
            gath = gath.astype(jnp.bfloat16).astype(jnp.float32)
            per_layer.append(jnp.sum(gath * sw_row, axis=-1))   # [B]
    loss = 0.0
    for sc in per_layer:                                        # CE with target 0
        gl = sc.reshape(T, G)
        logp = jax.nn.log_softmax(gl, axis=-1)
        loss += -jnp.mean(logp[:, 0])
    teacher = jax.nn.softmax(per_layer[-1].reshape(T, G), axis=-1)
    for sc in per_layer[:-1]:                                   # KD vs last layer
        logp = jax.nn.log_softmax(sc.reshape(T, G), axis=-1)
        loss += -jnp.mean(jnp.sum(logp * teacher, axis=-1))
    return loss, per_layer


if __name__ == "__main__":
    key = jax.random.PRNGKey(0)
    k1, k2, k3, k4, k5 = jax.random.split(key, 5)

    params = {
        "emb": jax.random.normal(k1, (V, H), jnp.float32) * 0.5,
        "W":   jax.random.normal(k2, (L, H, H), jnp.float32) * (1.0 / jnp.sqrt(H)),
        "b":   jax.random.normal(k3, (L, 1, H), jnp.float32) * 0.1,
        "sw":  jax.random.normal(k4, (H, 1), jnp.float32) * (1.0 / jnp.sqrt(H)),
    }

    input_ids = jax.random.randint(k5, (B, S), 0, V)
    attention_mask = jnp.ones((B, S), jnp.int32)
    # labels: a single "1" per row marks the label token; predict idx = that pos - 1
    label_pos = jnp.array([5, 6, 7, 4], jnp.int32)
    labels = jnp.zeros((B, S), jnp.int32).at[jnp.arange(B), label_pos].set(1)

    loss, scores = bi_encoder_forward(params, input_ids, attention_mask, labels,
                                      training=True)
    loss = jax.block_until_ready(loss)
    scores = jax.block_until_ready(scores)

    ref_loss, ref_scores = reference_forward(params, input_ids, labels)
    for c, want in enumerate(ref_scores):
        got = scores[:, c]
        assert jnp.allclose(got, want, rtol=2e-3, atol=2e-3), (c, got, want)
    assert jnp.allclose(loss, ref_loss, rtol=2e-3, atol=2e-3), (loss, ref_loss)

    print("KERNEL_OK")
</pallas_src>

<mosaic_0001>
module attributes {stable_mosaic.version = 11 : i64} {
  func.func @fused_kernel(%arg0: memref<4x1xi32, #tpu.memory_space<vmem>>, %arg1: memref<32x128xf32, #tpu.memory_space<vmem>>, %arg2: memref<4x128x128xbf16, #tpu.memory_space<vmem>>, %arg3: memref<4x1x128xf32, #tpu.memory_space<vmem>>, %arg4: memref<1x128xf32, #tpu.memory_space<vmem>>, %arg5: memref<4x3xf32, #tpu.memory_space<vmem>>, %arg6: memref<1xf32, #tpu.memory_space<smem>>) attributes {dimension_semantics = [], scalar_prefetch = 0 : i64, scratch_operands = 0 : i64, tpu.core_type = #tpu.core_type<tc>} {
    %0 = tpu.iota {dimensions = array<i32: 1>} : vector<4x32xi32>
    %c0 = arith.constant 0 : index
    %c0_0 = arith.constant 0 : index
    %1 = vector.load %arg0[%c0, %c0_0] : memref<4x1xi32, #tpu.memory_space<vmem>>, vector<4x1xi32>
    %2 = vector.broadcast %1 : vector<4x1xi32> to vector<4x32xi32>
    %3 = arith.cmpi eq, %0, %2 : vector<4x32xi32>
    %4 = arith.extui %3 : vector<4x32xi1> to vector<4x32xi32>
    %5 = arith.sitofp %4 : vector<4x32xi32> to vector<4x32xf32>
    %6 = arith.truncf %5 : vector<4x32xf32> to vector<4x32xbf16>
    %c0_1 = arith.constant 0 : index
    %c0_2 = arith.constant 0 : index
    %7 = vector.load %arg4[%c0_1, %c0_2] : memref<1x128xf32, #tpu.memory_space<vmem>>, vector<1x128xf32>
    %8 = tpu.iota {dimensions = array<i32: 1>} : vector<4x3xi32>
    %cst = arith.constant 0.000000e+00 : f32
    %9 = vector.broadcast %cst : f32 to vector<4x3xf32>
    %c0_3 = arith.constant 0 : index
    %c0_4 = arith.constant 0 : index
    %10 = vector.load %arg1[%c0_3, %c0_4] : memref<32x128xf32, #tpu.memory_space<vmem>>, vector<32x128xf32>
    %11 = arith.truncf %10 : vector<32x128xf32> to vector<32x128xbf16>
    %c0_5 = arith.constant 0 : index
    %c0_6 = arith.constant 0 : index
    %c0_7 = arith.constant 0 : index
    %12 = vector.load %arg2[%c0_5, %c0_6, %c0_7] : memref<4x128x128xbf16, #tpu.memory_space<vmem>>, vector<1x128x128xbf16>
    %13 = vector.shape_cast %12 : vector<1x128x128xbf16> to vector<128x128xbf16>
    %cst_8 = arith.constant dense<0.000000e+00> : vector<32x128xf32>
    %14 = tpu.matmul %11, %13, %cst_8 {dimension_numbers = #tpu.dot_dimension_numbers<[1], [0], [0], [1], [0, 0, 1, 1], [], []>} : vector<32x128xbf16>, vector<128x128xbf16>, vector<32x128xf32> -> vector<32x128xf32>
    %c0_9 = arith.constant 0 : index
    %c0_10 = arith.constant 0 : index
    %c0_11 = arith.constant 0 : index
    %15 = vector.load %arg3[%c0_9, %c0_10, %c0_11] : memref<4x1x128xf32, #tpu.memory_space<vmem>>, vector<1x1x128xf32>
    %16 = vector.shape_cast %15 : vector<1x1x128xf32> to vector<1x128xf32>
    %17 = vector.broadcast %16 : vector<1x128xf32> to vector<32x128xf32>
    %18 = arith.addf %14, %17 : vector<32x128xf32>
    %19 = math.tanh %18 : vector<32x128xf32>
    %20 = arith.truncf %19 : vector<32x128xf32> to vector<32x128xbf16>
    %c1 = arith.constant 1 : index
    %c0_12 = arith.constant 0 : index
    %c0_13 = arith.constant 0 : index
    %21 = vector.load %arg2[%c1, %c0_12, %c0_13] : memref<4x128x128xbf16, #tpu.memory_space<vmem>>, vector<1x128x128xbf16>
    %22 = vector.shape_cast %21 : vector<1x128x128xbf16> to vector<128x128xbf16>
    %cst_14 = arith.constant dense<0.000000e+00> : vector<32x128xf32>
    %23 = tpu.matmul %20, %22, %cst_14 {dimension_numbers = #tpu.dot_dimension_numbers<[1], [0], [0], [1], [0, 0, 1, 1], [], []>} : vector<32x128xbf16>, vector<128x128xbf16>, vector<32x128xf32> -> vector<32x128xf32>
    %c1_15 = arith.constant 1 : index
    %c0_16 = arith.constant 0 : index
    %c0_17 = arith.constant 0 : index
    %24 = vector.load %arg3[%c1_15, %c0_16, %c0_17] : memref<4x1x128xf32, #tpu.memory_space<vmem>>, vector<1x1x128xf32>
    %25 = vector.shape_cast %24 : vector<1x1x128xf32> to vector<1x128xf32>
    %26 = vector.broadcast %25 : vector<1x128xf32> to vector<32x128xf32>
    %27 = arith.addf %23, %26 : vector<32x128xf32>
    %28 = math.tanh %27 : vector<32x128xf32>
    %29 = arith.truncf %28 : vector<32x128xf32> to vector<32x128xbf16>
    %cst_18 = arith.constant dense<0.000000e+00> : vector<4x128xf32>
    %30 = tpu.matmul %6, %29, %cst_18 {dimension_numbers = #tpu.dot_dimension_numbers<[1], [0], [0], [1], [0, 0, 1, 1], [], []>} : vector<4x32xbf16>, vector<32x128xbf16>, vector<4x128xf32> -> vector<4x128xf32>
    %31 = vector.broadcast %7 : vector<1x128xf32> to vector<4x128xf32>
    %32 = arith.mulf %30, %31 : vector<4x128xf32>
    %cst_19 = arith.constant dense<0.000000e+00> : vector<4xf32>
    %33 = vector.multi_reduction <add>, %32, %cst_19 [1] : vector<4x128xf32> to vector<4xf32>
    %34 = vector.shape_cast %33 : vector<4xf32> to vector<4x1xf32>
    %c0_i32 = arith.constant 0 : i32
    %35 = vector.broadcast %c0_i32 : i32 to vector<4x3xi32>
    %36 = arith.cmpi eq, %8, %35 : vector<4x3xi32>
    %37 = vector.shape_cast %34 : vector<4x1xf32> to vector<4x1xf32>
    %38 = vector.broadcast %37 : vector<4x1xf32> to vector<4x3xf32>
    %39 = arith.select %36, %38, %9 : vector<4x3xi1>, vector<4x3xf32>
    %c2 = arith.constant 2 : index
    %c0_20 = arith.constant 0 : index
    %c0_21 = arith.constant 0 : index
    %40 = vector.load %arg2[%c2, %c0_20, %c0_21] : memref<4x128x128xbf16, #tpu.memory_space<vmem>>, vector<1x128x128xbf16>
    %41 = vector.shape_cast %40 : vector<1x128x128xbf16> to vector<128x128xbf16>
    %cst_22 = arith.constant dense<0.000000e+00> : vector<32x128xf32>
    %42 = tpu.matmul %29, %41, %cst_22 {dimension_numbers = #tpu.dot_dimension_numbers<[1], [0], [0], [1], [0, 0, 1, 1], [], []>} : vector<32x128xbf16>, vector<128x128xbf16>, vector<32x128xf32> -> vector<32x128xf32>
    %c2_23 = arith.constant 2 : index
    %c0_24 = arith.constant 0 : index
    %c0_25 = arith.constant 0 : index
    %43 = vector.load %arg3[%c2_23, %c0_24, %c0_25] : memref<4x1x128xf32, #tpu.memory_space<vmem>>, vector<1x1x128xf32>
    %44 = vector.shape_cast %43 : vector<1x1x128xf32> to vector<1x128xf32>
    %45 = vector.broadcast %44 : vector<1x128xf32> to vector<32x128xf32>
    %46 = arith.addf %42, %45 : vector<32x128xf32>
    %47 = math.tanh %46 : vector<32x128xf32>
    %48 = arith.truncf %47 : vector<32x128xf32> to vector<32x128xbf16>
    %cst_26 = arith.constant dense<0.000000e+00> : vector<4x128xf32>
    %49 = tpu.matmul %6, %48, %cst_26 {dimension_numbers = #tpu.dot_dimension_numbers<[1], [0], [0], [1], [0, 0, 1, 1], [], []>} : vector<4x32xbf16>, vector<32x128xbf16>, vector<4x128xf32> -> vector<4x128xf32>
    %50 = vector.broadcast %7 : vector<1x128xf32> to vector<4x128xf32>
    %51 = arith.mulf %49, %50 : vector<4x128xf32>
    %cst_27 = arith.constant dense<0.000000e+00> : vector<4xf32>
    %52 = vector.multi_reduction <add>, %51, %cst_27 [1] : vector<4x128xf32> to vector<4xf32>
    %53 = vector.shape_cast %52 : vector<4xf32> to vector<4x1xf32>
    %c1_i32 = arith.constant 1 : i32
    %54 = vector.broadcast %c1_i32 : i32 to vector<4x3xi32>
    %55 = arith.cmpi eq, %8, %54 : vector<4x3xi32>
    %56 = vector.shape_cast %53 : vector<4x1xf32> to vector<4x1xf32>
    %57 = vector.broadcast %56 : vector<4x1xf32> to vector<4x3xf32>
    %58 = arith.select %55, %57, %39 : vector<4x3xi1>, vector<4x3xf32>
    %c3 = arith.constant 3 : index
    %c0_28 = arith.constant 0 : index
    %c0_29 = arith.constant 0 : index
    %59 = vector.load %arg2[%c3, %c0_28, %c0_29] : memref<4x128x128xbf16, #tpu.memory_space<vmem>>, vector<1x128x128xbf16>
    %60 = vector.shape_cast %59 : vector<1x128x128xbf16> to vector<128x128xbf16>
    %cst_30 = arith.constant dense<0.000000e+00> : vector<32x128xf32>
    %61 = tpu.matmul %48, %60, %cst_30 {dimension_numbers = #tpu.dot_dimension_numbers<[1], [0], [0], [1], [0, 0, 1, 1], [], []>} : vector<32x128xbf16>, vector<128x128xbf16>, vector<32x128xf32> -> vector<32x128xf32>
    %c3_31 = arith.constant 3 : index
    %c0_32 = arith.constant 0 : index
    %c0_33 = arith.constant 0 : index
    %62 = vector.load %arg3[%c3_31, %c0_32, %c0_33] : memref<4x1x128xf32, #tpu.memory_space<vmem>>, vector<1x1x128xf32>
    %63 = vector.shape_cast %62 : vector<1x1x128xf32> to vector<1x128xf32>
    %64 = vector.broadcast %63 : vector<1x128xf32> to vector<32x128xf32>
    %65 = arith.addf %61, %64 : vector<32x128xf32>
    %66 = math.tanh %65 : vector<32x128xf32>
    %67 = arith.truncf %66 : vector<32x128xf32> to vector<32x128xbf16>
    %cst_34 = arith.constant dense<0.000000e+00> : vector<4x128xf32>
    %68 = tpu.matmul %6, %67, %cst_34 {dimension_numbers = #tpu.dot_dimension_numbers<[1], [0], [0], [1], [0, 0, 1, 1], [], []>} : vector<4x32xbf16>, vector<32x128xbf16>, vector<4x128xf32> -> vector<4x128xf32>
    %69 = vector.broadcast %7 : vector<1x128xf32> to vector<4x128xf32>
    %70 = arith.mulf %68, %69 : vector<4x128xf32>
    %cst_35 = arith.constant dense<0.000000e+00> : vector<4xf32>
    %71 = vector.multi_reduction <add>, %70, %cst_35 [1] : vector<4x128xf32> to vector<4xf32>
    %72 = vector.shape_cast %71 : vector<4xf32> to vector<4x1xf32>
    %c2_i32 = arith.constant 2 : i32
    %73 = vector.broadcast %c2_i32 : i32 to vector<4x3xi32>
    %74 = arith.cmpi eq, %8, %73 : vector<4x3xi32>
    %75 = vector.shape_cast %72 : vector<4x1xf32> to vector<4x1xf32>
    %76 = vector.broadcast %75 : vector<4x1xf32> to vector<4x3xf32>
    %77 = arith.select %74, %76, %58 : vector<4x3xi1>, vector<4x3xf32>
    %c0_36 = arith.constant 0 : index
    %c0_37 = arith.constant 0 : index
    %78 = vector.load %arg5[%c0_36, %c0_37] : memref<4x3xf32, #tpu.memory_space<vmem>>, vector<4x3xf32>
    tpu.vector_store %arg5[%c0_36, %c0_37], %77 {strides = array<i32>} : memref<4x3xf32, #tpu.memory_space<vmem>>, vector<4x3xf32>,
    %79 = vector.extract_strided_slice %77 {offsets = [0, 0], sizes = [2, 3], strides = [1, 1]} : vector<4x3xf32> to vector<2x3xf32>
    %cst_38 = arith.constant dense<0xFF800000> : vector<3xf32>
    %80 = vector.multi_reduction <maximumf>, %79, %cst_38 [0] : vector<2x3xf32> to vector<3xf32>
    %81 = vector.shape_cast %80 : vector<3xf32> to vector<1x3xf32>
    %82 = vector.broadcast %81 : vector<1x3xf32> to vector<2x3xf32>
    %83 = arith.subf %79, %82 : vector<2x3xf32>
    %84 = math.exp %83 : vector<2x3xf32>
    %cst_39 = arith.constant dense<0.000000e+00> : vector<3xf32>
    %85 = vector.multi_reduction <add>, %84, %cst_39 [0] : vector<2x3xf32> to vector<3xf32>
    %86 = vector.shape_cast %85 : vector<3xf32> to vector<1x3xf32>
    %87 = math.log %86 : vector<1x3xf32>
    %88 = arith.addf %81, %87 : vector<1x3xf32>
    %89 = vector.extract_strided_slice %79 {offsets = [0, 0], sizes = [1, 3], strides = [1, 1]} : vector<2x3xf32> to vector<1x3xf32>
    %90 = arith.subf %88, %89 : vector<1x3xf32>
    %91 = vector.shape_cast %90 : vector<1x3xf32> to vector<1x1x3xf32>
    %cst_40 = arith.constant dense<0.000000e+00> : vector<1xf32>
    %92 = vector.multi_reduction <add>, %91, %cst_40 [1, 2] : vector<1x1x3xf32> to vector<1xf32>
    %93 = vector.shape_cast %92 : vector<1xf32> to vector<1x1x1xf32>
    %94 = vector.extract %93[0, 0, 0] : f32 from vector<1x1x1xf32>
    %cst_41 = arith.constant 0.000000e+00 : f32
    %95 = arith.addf %cst_41, %94 : f32
    %96 = vector.broadcast %88 : vector<1x3xf32> to vector<2x3xf32>
    %97 = arith.subf %79, %96 : vector<2x3xf32>
    %98 = vector.extract_strided_slice %79 {offsets = [0, 2], sizes = [2, 1], strides = [1, 1]} : vector<2x3xf32> to vector<2x1xf32>
    %cst_42 = arith.constant dense<0xFF800000> : vector<1xf32>
    %99 = vector.multi_reduction <maximumf>, %98, %cst_42 [0] : vector<2x1xf32> to vector<1xf32>
    %100 = vector.shape_cast %99 : vector<1xf32> to vector<1x1xf32>
    %101 = vector.broadcast %100 : vector<1x1xf32> to vector<2x1xf32>
    %102 = arith.subf %98, %101 : vector<2x1xf32>
    %103 = math.exp %102 : vector<2x1xf32>
    %cst_43 = arith.constant dense<0.000000e+00> : vector<1xf32>
    %104 = vector.multi_reduction <add>, %103, %cst_43 [0] : vector<2x1xf32> to vector<1xf32>
    %105 = vector.shape_cast %104 : vector<1xf32> to vector<1x1xf32>
    %106 = vector.broadcast %105 : vector<1x1xf32> to vector<2x1xf32>
    %107 = arith.divf %103, %106 : vector<2x1xf32>
    %108 = vector.extract_strided_slice %97 {offsets = [0, 0], sizes = [2, 2], strides = [1, 1]} : vector<2x3xf32> to vector<2x2xf32>
    %109 = vector.broadcast %107 : vector<2x1xf32> to vector<2x2xf32>
    %110 = arith.mulf %108, %109 : vector<2x2xf32>
    %111 = vector.shape_cast %110 : vector<2x2xf32> to vector<1x2x2xf32>
    %cst_44 = arith.constant dense<0.000000e+00> : vector<1xf32>
    %112 = vector.multi_reduction <add>, %111, %cst_44 [1, 2] : vector<1x2x2xf32> to vector<1xf32>
    %113 = vector.shape_cast %112 : vector<1xf32> to vector<1x1x1xf32>
    %114 = vector.extract %113[0, 0, 0] : f32 from vector<1x1x1xf32>
    %cst_45 = arith.constant 0.000000e+00 : f32
    %115 = arith.subf %cst_45, %114 : f32
    %116 = vector.extract_strided_slice %77 {offsets = [2, 0], sizes = [2, 3], strides = [1, 1]} : vector<4x3xf32> to vector<2x3xf32>
    %cst_46 = arith.constant dense<0xFF800000> : vector<3xf32>
    %117 = vector.multi_reduction <maximumf>, %116, %cst_46 [0] : vector<2x3xf32> to vector<3xf32>
    %118 = vector.shape_cast %117 : vector<3xf32> to vector<1x3xf32>
    %119 = vector.broadcast %118 : vector<1x3xf32> to vector<2x3xf32>
    %120 = arith.subf %116, %119 : vector<2x3xf32>
    %121 = math.exp %120 : vector<2x3xf32>
    %cst_47 = arith.constant dense<0.000000e+00> : vector<3xf32>
    %122 = vector.multi_reduction <add>, %121, %cst_47 [0] : vector<2x3xf32> to vector<3xf32>
    %123 = vector.shape_cast %122 : vector<3xf32> to vector<1x3xf32>
    %124 = math.log %123 : vector<1x3xf32>
    %125 = arith.addf %118, %124 : vector<1x3xf32>
    %126 = vector.extract_strided_slice %116 {offsets = [0, 0], sizes = [1, 3], strides = [1, 1]} : vector<2x3xf32> to vector<1x3xf32>
    %127 = arith.subf %125, %126 : vector<1x3xf32>
    %128 = vector.shape_cast %127 : vector<1x3xf32> to vector<1x1x3xf32>
    %cst_48 = arith.constant dense<0.000000e+00> : vector<1xf32>
    %129 = vector.multi_reduction <add>, %128, %cst_48 [1, 2] : vector<1x1x3xf32> to vector<1xf32>
    %130 = vector.shape_cast %129 : vector<1xf32> to vector<1x1x1xf32>
    %131 = vector.extract %130[0, 0, 0] : f32 from vector<1x1x1xf32>
    %132 = arith.addf %95, %131 : f32
    %133 = vector.broadcast %125 : vector<1x3xf32> to vector<2x3xf32>
    %134 = arith.subf %116, %133 : vector<2x3xf32>
    %135 = vector.extract_strided_slice %116 {offsets = [0, 2], sizes = [2, 1], strides = [1, 1]} : vector<2x3xf32> to vector<2x1xf32>
    %cst_49 = arith.constant dense<0xFF800000> : vector<1xf32>
    %136 = vector.multi_reduction <maximumf>, %135, %cst_49 [0] : vector<2x1xf32> to vector<1xf32>
    %137 = vector.shape_cast %136 : vector<1xf32> to vector<1x1xf32>
    %138 = vector.broadcast %137 : vector<1x1xf32> to vector<2x1xf32>
    %139 = arith.subf %135, %138 : vector<2x1xf32>
    %140 = math.exp %139 : vector<2x1xf32>
    %cst_50 = arith.constant dense<0.000000e+00> : vector<1xf32>
    %141 = vector.multi_reduction <add>, %140, %cst_50 [0] : vector<2x1xf32> to vector<1xf32>
    %142 = vector.shape_cast %141 : vector<1xf32> to vector<1x1xf32>
    %143 = vector.broadcast %142 : vector<1x1xf32> to vector<2x1xf32>
    %144 = arith.divf %140, %143 : vector<2x1xf32>
    %145 = vector.extract_strided_slice %134 {offsets = [0, 0], sizes = [2, 2], strides = [1, 1]} : vector<2x3xf32> to vector<2x2xf32>
    %146 = vector.broadcast %144 : vector<2x1xf32> to vector<2x2xf32>
    %147 = arith.mulf %145, %146 : vector<2x2xf32>
    %148 = vector.shape_cast %147 : vector<2x2xf32> to vector<1x2x2xf32>
    %cst_51 = arith.constant dense<0.000000e+00> : vector<1xf32>
    %149 = vector.multi_reduction <add>, %148, %cst_51 [1, 2] : vector<1x2x2xf32> to vector<1xf32>
    %150 = vector.shape_cast %149 : vector<1xf32> to vector<1x1x1xf32>
    %151 = vector.extract %150[0, 0, 0] : f32 from vector<1x1x1xf32>
    %152 = arith.subf %115, %151 : f32
    %153 = arith.addf %132, %152 : f32
    %cst_52 = arith.constant 2.000000e+00 : f32
    %154 = arith.divf %153, %cst_52 : f32
    %c0_53 = arith.constant 0 : index
    %155 = memref.load %arg6[%c0_53] : memref<1xf32, #tpu.memory_space<smem>>
    memref.store %154, %arg6[%c0_53] : memref<1xf32, #tpu.memory_space<smem>>
    return
  }
}

</mosaic_0001>

<bundles_post_ra>
// kernel: bi_encoder_forward.1
= control target key start
LH: loop header
LB: loop body
LE: loop exit
PB: predicated region body
PF: predicated region fallthrough
CT: control target
= control target key end

     0   :  { %12 = vsyncpa [#allocation3], 0  ;;  %s1487_s0 = inlined_call_operand.vmem [shape: s32[4,1], index: 0, kind: input, shape index: {}]   ;;  %s1488_s1 = inlined_call_operand.vmem [shape: f32[32,128], index: 1, kind: input, shape index: {}]   ;;  %s1489_s2 = inlined_call_operand.vmem [shape: bf16[4,128,128], index: 2, kind: input, shape index: {}]   ;;  %s1490_s3 = inlined_call_operand.vmem [shape: f32[4,1,128], index: 3, kind: input, shape index: {}]   ;;  %s1491_s4 = inlined_call_operand.vmem [shape: f32[1,128], index: 4, kind: input, shape index: {}]   ;;  %s1492_s5 = inlined_call_operand.hbm [shape: f32[4,3], index: 5, kind: output, shape index: {0}]   ;;  %s1493_s6 = inlined_call_operand.hbm [shape: f32[1], index: 6, kind: output, shape index: {1}]  }
   0x1   :  { %v1154_v0 = vld [vmem:[%s1489_s2 + $0x38] sm:$0xff]   ;;  %v1155_v1 = vld [vmem:[%s1489_s2 + $0x30] sm:$0xff]   ;;  %v1156_v2 = vld [vmem:[%s1489_s2 + $0x28] sm:$0xff]  }
   0x2   :  { %1033 = vmatprep.subr.bf16.mxu0 %v1154_v0  ;;  %v1157_v3 = vld [vmem:[%s1489_s2 + $0x20] sm:$0xff]   ;;  %v37_v5 = vld [vmem:[%s1488_s1 + $0x8] sm:$0xff]  ;;  %v1158_v7 = vld [vmem:[%s1489_s2 + $0x18] sm:$0xff]  }
   0x3   :  { %1034 = vmatpush3.bf16.msra.mxu0 %v1154_v0  ;;  %v36_v4 = vld [vmem:[%s1488_s1] sm:$0xff]  ;;  %v1162_v8 = vld [vmem:[%s1489_s2 + $0x78] sm:$0xff]   ;;  %v1163_v9 = vld [vmem:[%s1489_s2 + $0x70] sm:$0xff]  }
   0x4   :  { %1035 = vmatprep.subr.bf16.mxu0 %v1155_v1  ;;  %v40_v6 = vpack.c.bf16 %v37_v5, %v36_v4  ;;  %1053 = vmatprep.subr.bf16.mxu1 %v1162_v8  ;;  %v1159_v10 = vld [vmem:[%s1489_s2 + $0x10] sm:$0xff]   ;;  %v1160_v11 = vld [vmem:[%s1489_s2 + $0x8] sm:$0xff]   ;;  %v1161_v12 = vld [vmem:[%s1489_s2] sm:$0xff]  }
   0x5   :  { %1054 = vmatpush3.bf16.msra.mxu1 %v1162_v8 }
   0x6   :  { %1049 = vmatprep.mubr.bf16.mxu0 %v40_v6  ;;  %1055 = vmatprep.subr.bf16.mxu1 %v1163_v9 }
   0x7   :  { %1036 = vmatpush3.bf16.msra.mxu0 %v1155_v1 }
   0x8   :  { %1037 = vmatprep.subr.bf16.mxu0 %v1156_v2 }
   0x9   :  { %1056 = vmatpush3.bf16.msra.mxu1 %v1163_v9 }
   0xb   :  { %1038 = vmatpush3.bf16.msra.mxu0 %v1156_v2 }
   0xc   :  { %1039 = vmatprep.subr.bf16.mxu0 %v1157_v3 }
   0xf   :  { %1040 = vmatpush3.bf16.msra.mxu0 %v1157_v3 }
  0x10   :  { %1041 = vmatprep.subr.bf16.mxu0 %v1158_v7 }
  0x13   :  { %1042 = vmatpush3.bf16.msra.mxu0 %v1158_v7 }
  0x14   :  { %1043 = vmatprep.subr.bf16.mxu0 %v1159_v10 }
  0x17   :  { %1044 = vmatpush3.bf16.msra.mxu0 %v1159_v10 }
  0x18   :  { %1045 = vmatprep.subr.bf16.mxu0 %v1160_v11 }
  0x19   :  { %13 = vsyncpa [#allocation4], 0  ;;  %v38_v13 = vld [vmem:[%s1488_s1 + $0x10] sm:$0xff]  ;;  %v39_v14 = vld [vmem:[%s1488_s1 + $0x18] sm:$0xff]  ;;  %v1266_v43 = vmov 0.0   ;;  %v1267_v47 = vmov 0   ;;  %v25_v63 = vlaneseq }
  0x1a   :  { %v41_v15 = vpack.c.bf16 %v39_v14, %v38_v13  ;;  %v1164_v16 = vld [vmem:[%s1489_s2 + $0x68] sm:$0xff]   ;;  %v1165_v17 = vld [vmem:[%s1489_s2 + $0x60] sm:$0xff]   ;;  %v1166_v18 = vld [vmem:[%s1489_s2 + $0x58] sm:$0xff]   ;;  %1151 = vset.pattern.permute.xlu0 %v1267_v47  ;;  %vm1268_vm0 = vmmov 0   ;;  %vm296_vm2 = vcmask 261120   ;;  %vm347_vm3 = vcmask 1043456  }
  0x1b   :  { %1046 = vmatpush3.bf16.msra.mxu0 %v1160_v11  ;;  %1057 = vmatprep.subr.bf16.mxu1 %v1164_v16  ;;  %v1167_v19 = vld [vmem:[%s1489_s2 + $0x50] sm:$0xff]   ;;  %v1168_v20 = vld [vmem:[%s1489_s2 + $0x48] sm:$0xff]   ;;  %v1169_v21 = vld [vmem:[%s1489_s2 + $0x40] sm:$0xff]   ;;  %v1406_v1 = vand.u32 127, %v25_v63  ;;  %vm738_vm7 = vcmask 17424   ;;  %vm816_vm8 = vcmask 19474  }
  0x1c   :  { %1047 = vmatprep.subr.bf16.mxu0 %v1161_v12  ;;  %1058 = vmatpush3.bf16.msra.mxu1 %v1164_v16  ;;  %v1170_v22 = vld [vmem:[%s1489_s2 + $0xb8] sm:$0xff]   ;;  %v893_v24 = vld [vmem:[%s1490_s3] ss:$0 sm:$0xff]  ;;  %v1171_v38 = vld [vmem:[%s1489_s2 + $0xb0] sm:$0xff]   ;;  %vm703_vm9 = vcmask 17408   ;;  %vm776_vm10 = vcmask 19458  }
  0x1d   :  { %1059 = vmatprep.subr.bf16.mxu1 %v1165_v17  ;;  %v1172_v39 = vld [vmem:[%s1489_s2 + $0xa8] sm:$0xff]   ;;  %v1173_v40 = vld [vmem:[%s1489_s2 + $0xa0] sm:$0xff]   ;;  %v1174_v41 = vld [vmem:[%s1489_s2 + $0x98] sm:$0xff]   ;;  %vm351_vm4 = vcmp.eq.s32.totalorder %v1406_v1, 0  ;;  %vm525_vm5 = vcmp.eq.s32.totalorder %v1406_v1, 1  ;;  %vm699_vm6 = vcmp.eq.s32.totalorder %v1406_v1, 2 }
  0x1e   :  { %v1175_v42 = vld [vmem:[%s1489_s2 + $0x90] sm:$0xff]   ;;  %v1176_v44 = vld [vmem:[%s1489_s2 + $0x88] sm:$0xff]   ;;  %v1177_v45 = vld [vmem:[%s1489_s2 + $0x80] sm:$0xff]   ;;  %vm701_vm11 = vcmask 19456   ;;  %vm725_vm12 = vcmask 16384   ;;  %vm764_vm13 = vcmask 9216  }
  0x1f   :  { %1048 = vmatpush3.bf16.msra.mxu0 %v1161_v12  ;;  %v27_v46 = vld [vmem:[%s1487_s0] sm:$0xf] }
  0x20   :  { %1060 = vmatpush3.bf16.msra.mxu1 %v1165_v17  ;;  %1073 = vmatprep.subr.bf16.mxu0 %v1266_v43  ;;  %v919_v48 = vld [vmem:[%s1490_s3 + $0x1] ss:$0 sm:$0xff]  ;;  %v947_v4 = vld [vmem:[%s1490_s3 + $0x2] ss:$0 sm:$0xff] }
  0x21   :  { %1061 = vmatprep.subr.bf16.mxu1 %v1166_v18  ;;  %29 = vperm.xlu0 %1151, %v27_v46  }
  0x22   :  { %1050 = vmatmul.mubr.bf16.vlgmr.msra.gmra.mxu0 %v41_v15 }
  0x23   :  { %1077 = vmatprep.mubr.msk.bf16.mxu0 %vm1268_vm0, %v1266_v43 }
  0x24   :  { %1062 = vmatpush3.bf16.msra.mxu1 %v1166_v18  ;;  %v1178_v18 = vld [vmem:[%s1489_s2 + $0xf8] sm:$0xff]  }
  0x25   :  { %1063 = vmatprep.subr.bf16.mxu1 %v1167_v19 }
  0x28   :  { %1064 = vmatpush3.bf16.msra.mxu1 %v1167_v19 }
  0x29   :  { %1065 = vmatprep.subr.bf16.mxu1 %v1168_v20 }
  0x2c   :  { %1066 = vmatpush3.bf16.msra.mxu1 %v1168_v20  ;;  %v1179_v20 = vld [vmem:[%s1489_s2 + $0xf0] sm:$0xff]  }
  0x2d   :  { %1067 = vmatprep.subr.bf16.mxu1 %v1169_v21 }
  0x30   :  { %1068 = vmatpush3.bf16.msra.mxu1 %v1169_v21  ;;  %v1180_v21 = vld [vmem:[%s1489_s2 + $0xe8] sm:$0xff]  }
  0x31   :  { %1081 = vmatprep.subr.bf16.mxu1 %v1170_v22 }
  0x9c   :  { %v30_v0 = vpop.permute.xlu0 %29 }
  0x9d   :  { %vm31_vm1 = vcmp.eq.s32.totalorder %v1406_v1, %v30_v0 }
  0x9e   :  { %v892_v2 = vsel %vm31_vm1, 1.0, %v1266_v43 }
  0x9f   :  { %v1410_v3 = vpack.c.bf16 %v892_v2, %v892_v2 }
  0xe2   :  { %v1051_v23 = vpop.f32.mrf.mxu0 }
  0xe3   :  { %v156_v29 = vadd.f32 %v1051_v23, %v893_v24  ;;  %v1182_v23 = vld [vmem:[%s1489_s2 + $0xd8] sm:$0xff]  }
  0xe4   :  { %v147_v25 = vpop.f32.mrf.mxu0 }
  0xe5   :  { %v148_v26 = vadd.f32 %v893_v24, %v147_v25  ;;  %v1184_v25 = vld [vmem:[%s1489_s2 + $0xc8] sm:$0xff]  }
  0xe6   :  { %v1052_v27 = vpop.f32.mrf.mxu0 }
  0xe7   :  { %v159_v28 = vadd.f32 %v1052_v27, %v893_v24  ;;  %1186 = vtanh.f32 %v148_v26  ;;  %v1185_v26 = vld [vmem:[%s1489_s2 + $0xc0] sm:$0xff]  }
  0xe8   :  { %v150_v30 = vpop.f32.mrf.mxu0  ;;  %v929_v27 = vld [vmem:[%s1491_s4] ss:$0 sm:$0xff] }
  0xe9   :  { %v151_v31 = vadd.f32 %v893_v24, %v150_v30  ;;  %1188 = vtanh.f32 %v159_v28  ;;  %v1183_v24 = vld [vmem:[%s1489_s2 + $0xd0] sm:$0xff]  }
  0xeb   :  { %1190 = vtanh.f32 %v151_v31 }
  0xec   :  { %1192 = vtanh.f32 %v156_v29 }
  0xf4   :  { %v1187_v32 = vpop.eup %1186 }
  0xf6   :  { %v1189_v33 = vpop.eup %1188 }
  0xf8   :  { %v1191_v34 = vpop.eup %1190 }
  0xf9   :  { %v1193_v35 = vpop.eup %1192  ;;  %v166_v36 = vpack.c.bf16 %v1191_v34, %v1187_v32 }
  0xfa   :  { %v167_v37 = vpack.c.bf16 %v1189_v33, %v1193_v35 }
  0xfb   :  { %1069 = vmatprep.mubr.bf16.mxu1 %v166_v36 }
  0xfc   :  { %1070 = vmatmul.mubr.bf16.vlgmr.msra.gmra.mxu1 %v167_v37 }
  0xfd   :  { %1082 = vmatpush3.bf16.msra.mxu1 %v1170_v22  ;;  %v1181_v22 = vld [vmem:[%s1489_s2 + $0xe0] sm:$0xff]  }
  0xfe   :  { %1083 = vmatprep.subr.bf16.mxu1 %v1171_v38 }
 0x101   :  { %1084 = vmatpush3.bf16.msra.mxu1 %v1171_v38 }
 0x102   :  { %1085 = vmatprep.subr.bf16.mxu1 %v1172_v39 }
 0x105   :  { %1086 = vmatpush3.bf16.msra.mxu1 %v1172_v39 }
 0x106   :  { %1087 = vmatprep.subr.bf16.mxu1 %v1173_v40 }
 0x109   :  { %1088 = vmatpush3.bf16.msra.mxu1 %v1173_v40  ;;  %v974_v40 = vld [vmem:[%s1490_s3 + $0x3] ss:$0 sm:$0xff]  ;;  %s1270_s3 = smov [#allocation2]  }
 0x10a   :  { %1089 = vmatprep.subr.bf16.mxu1 %v1174_v41  ;;  %s871_s4 = sshll.u32 %s1270_s3, 4  ;;  %s872_s4 = int_to_ptr.vmem [resolvable:$true] %s871_s4 }
 0x10b   :  { %s1234_s29 = scalar_lea.vmem %s872_s4, 64  ;;  %p1239_p1 = scmp.lt.s32.totalorder %s872_s4, %s872_s4 }
 0x10c   :  { %p1235_p0 = scmp.ne.s32.totalorder %s872_s4, %s1234_s29  ;;  %p1240_p2 = scmp.lt.s32.totalorder %s1234_s29, %s1234_s29 }
 0x10d   :  { %1090 = vmatpush3.bf16.msra.mxu1 %v1174_v41 }
 0x10e   :  { %1091 = vmatprep.subr.bf16.mxu1 %v1175_v42  ;;  %p1241_p3 = por %p1240_p2, %p1239_p1 }
 0x110   :  { %p1242_p4 = pnand %p1241_p3, %p1235_p0 }
 0x111   :  { %1092 = vmatpush3.bf16.msra.mxu1 %v1175_v42 }
 0x112   :  { %1093 = vmatprep.subr.bf16.mxu1 %v1176_v44 }
 0x115   :  { %1094 = vmatpush3.bf16.msra.mxu1 %v1176_v44 }
 0x116   :  { %1095 = vmatprep.subr.bf16.mxu1 %v1177_v45 }
 0x119   :  { %1096 = vmatpush3.bf16.msra.mxu1 %v1177_v45 }
 0x11a   :  { %1129 = vmatprep.subr.bf16.mxu1 %v1266_v43 }
 0x1bc   :  { %v1071_v49 = vpop.f32.mrf.mxu1 }
 0x1bd   :  { %v284_v50 = vadd.f32 %v1071_v49, %v919_v48 }
 0x1be   :  { %v275_v51 = vpop.f32.mrf.mxu1 }
 0x1bf   :  { %v276_v52 = vadd.f32 %v919_v48, %v275_v51  ;;  %1194 = vtanh.f32 %v284_v50 }
 0x1c0   :  { %v1072_v53 = vpop.f32.mrf.mxu1 }
 0x1c1   :  { %v287_v54 = vadd.f32 %v1072_v53, %v919_v48 }
 0x1c2   :  { %v278_v55 = vpop.f32.mrf.mxu1 }
 0x1c3   :  { %1196 = vtanh.f32 %v287_v54  ;;  %v279_v56 = vadd.f32 %v919_v48, %v278_v55 }
 0x1c4   :  { %1198 = vtanh.f32 %v276_v52 }
 0x1c5   :  { %1200 = vtanh.f32 %v279_v56 }
 0x1cc   :  { %v1195_v57 = vpop.eup %1194 }
 0x1d0   :  { %v1197_v58 = vpop.eup %1196 }
 0x1d1   :  { %v1199_v59 = vpop.eup %1198  ;;  %v295_v60 = vpack.c.bf16 %v1197_v58, %v1195_v57 }
 0x1d2   :  { %v1201_v61 = vpop.eup %1200 }
 0x1d3   :  { %1074 = vmatpush3.bf16.msra.mxu0 %v295_v60  ;;  %v294_v62 = vpack.c.bf16 %v1201_v61, %v1199_v59 }
 0x1d4   :  { %1075 = vmatprep.subr.bf16.mxu0 %v1266_v43 }
 0x1d5   :  { %1097 = vmatprep.mubr.bf16.mxu1 %v294_v62 }
 0x1d6   :  { %1098 = vmatmul.mubr.bf16.vlgmr.msra.gmra.mxu1 %v295_v60 }
 0x1d7   :  { %1076 = vmatpush3.bf16.msra.mxu0 %v294_v62  ;;  %1133 = vmatprep.mubr.msk.bf16.mxu1 %vm1268_vm0, %v1266_v43  ;;  %v1269_v62 = vmov 2  }
 0x1d8   :  { %1101 = vmatprep.subr.bf16.mxu0 %v1266_v43  ;;  %1152 = vset.pattern.permute.xlu1 %v1269_v62 }
 0x1d9   :  { %1153 = vset.pattern.permute.xlu0 %v1269_v62 }
 0x1da   :  { %1078 = vmatmul.mubr.msk.bf16.vlgmr.msra.gmra.mxu0 %vm296_vm2, %v1410_v3 }
 0x1db   :  { %1105 = vmatprep.mubr.msk.bf16.mxu0 %vm1268_vm0, %v1266_v43 }
 0x296   :  { %v1099_v5 = vpop.f32.mrf.mxu1 }
 0x297   :  { %v469_v6 = vadd.f32 %v1099_v5, %v947_v4 }
 0x298   :  { %v460_v7 = vpop.f32.mrf.mxu1 }
 0x299   :  { %1202 = vtanh.f32 %v469_v6  ;;  %v461_v11 = vadd.f32 %v947_v4, %v460_v7 }
 0x29a   :  { %v1100_v8 = vpop.f32.mrf.mxu1  ;;  %v334_v28 = vpop.f32.mrf.mxu0 }
 0x29b   :  { %v472_v9 = vadd.f32 %v1100_v8, %v947_v4  ;;  %v346_v29 = vmul.f32 %v929_v27, %v334_v28 }
 0x29c   :  { %v463_v10 = vpop.f32.mrf.mxu1  ;;  %v1079_v30 = vpop.f32.mrf.mxu0 }
 0x29d   :  { %1204 = vtanh.f32 %v472_v9  ;;  %v464_v12 = vadd.f32 %v947_v4, %v463_v10  ;;  %v348_v31 = vsel %vm347_vm3, %v346_v29, 0.0 }
 0x29e   :  { %v337_v32 = vpop.f32.mrf.mxu0  ;;  %349 = vadd.xlane.f32.xlu0 %v348_v31 }
 0x29f   :  { %1206 = vtanh.f32 %v464_v12 }
 0x2a0   :  { %1208 = vtanh.f32 %v461_v11  ;;  %v1080_v33 = vpop.f32.mrf.mxu0 }
 0x2a6   :  { %v1203_v13 = vpop.eup %1202 }
 0x2aa   :  { %v1205_v14 = vpop.eup %1204 }
 0x2ab   :  { %v480_v15 = vpack.c.bf16 %v1205_v14, %v1203_v13 }
 0x2ac   :  { %v1207_v16 = vpop.eup %1206 }
 0x2ad   :  { %1102 = vmatpush3.bf16.msra.mxu0 %v480_v15  ;;  %v1209_v17 = vpop.eup %1208 }
 0x2ae   :  { %1103 = vmatprep.subr.bf16.mxu0 %v1266_v43  ;;  %v479_v19 = vpack.c.bf16 %v1207_v16, %v1209_v17 }
 0x2b1   :  { %1104 = vmatpush3.bf16.msra.mxu0 %v479_v19 }
 0x2b2   :  { %1109 = vmatprep.subr.bf16.mxu0 %v1178_v18 }
 0x2b4   :  { %1106 = vmatmul.mubr.msk.bf16.vlgmr.msra.gmra.mxu0 %vm296_vm2, %v1410_v3 }
 0x2b5   :  { %1110 = vmatpush3.bf16.msra.mxu0 %v1178_v18  ;;  %1125 = vmatprep.mubr.bf16.mxu0 %v479_v19 }
 0x2b6   :  { %1111 = vmatprep.subr.bf16.mxu0 %v1179_v20 }
 0x2b9   :  { %1112 = vmatpush3.bf16.msra.mxu0 %v1179_v20 }
 0x2ba   :  { %1113 = vmatprep.subr.bf16.mxu0 %v1180_v21 }
 0x2bd   :  { %1114 = vmatpush3.bf16.msra.mxu0 %v1180_v21 }
 0x2be   :  { %1115 = vmatprep.subr.bf16.mxu0 %v1181_v22 }
 0x2c1   :  { %1116 = vmatpush3.bf16.msra.mxu0 %v1181_v22 }
 0x2c2   :  { %1117 = vmatprep.subr.bf16.mxu0 %v1182_v23 }
 0x2c5   :  { %1118 = vmatpush3.bf16.msra.mxu0 %v1182_v23 }
 0x2c6   :  { %1119 = vmatprep.subr.bf16.mxu0 %v1183_v24 }
 0x2c9   :  { %1120 = vmatpush3.bf16.msra.mxu0 %v1183_v24 }
 0x2ca   :  { %1121 = vmatprep.subr.bf16.mxu0 %v1184_v25 }
 0x2cd   :  { %1122 = vmatpush3.bf16.msra.mxu0 %v1184_v25 }
 0x2ce   :  { %1123 = vmatprep.subr.bf16.mxu0 %v1185_v26 }
 0x2d1   :  { %1124 = vmatpush3.bf16.msra.mxu0 %v1185_v26 }
 0x2d4   :  { %1126 = vmatmul.mubr.bf16.vlgmr.msra.gmra.mxu0 %v480_v15 }
 0x327   :  { %v350_v63 = vpop.xlane.xlu0 %349 }
 0x328   :  { %v352_v0 = vsel %vm351_vm4, %v350_v63, 0.0 }
 0x374   :  { %v515_v34 = vpop.f32.mrf.mxu0 }
 0x375   :  { %v521_v35 = vmul.f32 %v929_v27, %v515_v34 }
 0x376   :  { %v1107_v36 = vpop.f32.mrf.mxu0 }
 0x377   :  { %v522_v37 = vsel %vm347_vm3, %v521_v35, 0.0 }
 0x378   :  { %523 = vadd.xlane.f32.xlu1 %v522_v37  ;;  %v518_v38 = vpop.f32.mrf.mxu0 }
 0x37a   :  { %v1108_v39 = vpop.f32.mrf.mxu0 }
 0x394   :  { %v1127_v41 = vpop.f32.mrf.mxu0 }
 0x395   :  { %v643_v42 = vadd.f32 %v1127_v41, %v974_v40 }
 0x396   :  { %v634_v44 = vpop.f32.mrf.mxu0 }
 0x397   :  { %1210 = vtanh.f32 %v643_v42  ;;  %v635_v48 = vadd.f32 %v974_v40, %v634_v44 }
 0x398   :  { %v1128_v45 = vpop.f32.mrf.mxu0 }
 0x399   :  { %v646_v46 = vadd.f32 %v1128_v45, %v974_v40 }
 0x39a   :  { %v637_v47 = vpop.f32.mrf.mxu0 }
 0x39b   :  { %1212 = vtanh.f32 %v646_v46  ;;  %v638_v49 = vadd.f32 %v974_v40, %v637_v47 }
 0x39d   :  { %1214 = vtanh.f32 %v638_v49 }
 0x39e   :  { %1216 = vtanh.f32 %v635_v48 }
 0x3a4   :  { %v1211_v50 = vpop.eup %1210 }
 0x3a8   :  { %v1213_v51 = vpop.eup %1212 }
 0x3a9   :  { %v654_v52 = vpack.c.bf16 %v1213_v51, %v1211_v50 }
 0x3aa   :  { %v1215_v53 = vpop.eup %1214 }
 0x3ab   :  { %1130 = vmatpush3.bf16.msra.mxu1 %v654_v52  ;;  %v1217_v54 = vpop.eup %1216 }
 0x3ac   :  { %1131 = vmatprep.subr.bf16.mxu1 %v1266_v43  ;;  %v653_v55 = vpack.c.bf16 %v1215_v53, %v1217_v54 }
 0x3af   :  { %1132 = vmatpush3.bf16.msra.mxu1 %v653_v55 }
 0x3b2   :  { %1134 = vmatmul.mubr.msk.bf16.vlgmr.msra.gmra.mxu1 %vm296_vm2, %v1410_v3 }
 0x401   :  { %v524_v43 = vpop.xlane.xlu1 %523 }
 0x402   :  { %v526_v2 = vsel %vm525_vm5, %v524_v43, %v352_v0 }
 0x472   :  { %v689_v56 = vpop.f32.mrf.mxu1 }
 0x473   :  { %v695_v57 = vmul.f32 %v929_v27, %v689_v56 }
 0x474   :  { %v1135_v58 = vpop.f32.mrf.mxu1 }
 0x475   :  { %v696_v59 = vsel %vm347_vm3, %v695_v57, 0.0 }
 0x476   :  { %697 = vadd.xlane.f32.xlu1 %v696_v59  ;;  %v692_v60 = vpop.f32.mrf.mxu1 }
 0x478   :  { %v1136_v61 = vpop.f32.mrf.mxu1 }
 0x4ff   :  { %v698_v3 = vpop.xlane.xlu1 %697 }
 0x500   :  { %v1460_v4 = vsel %vm699_vm6, %v698_v3, %v526_v2 }
 0x501   :  { %v739_v5 = vsel %vm738_vm7, %v1460_v4, -inf  ;;  %v817_v6 = vsel %vm816_vm8, %v1460_v4, -inf  ;;  %v777_v7 = vsel %vm776_vm10, %v1460_v4, -inf  ;;  %v704_v8 = vsel %vm703_vm9, %v1460_v4, -inf  ;;  %702 = vst.msk [vmem:[#allocation2] sm:$0xf] %vm701_vm11, %v1460_v4 }
 0x502   :  { %v740_v1 = vrot.slane %v739_v5, 4  ;;  %v818_v9 = vrot.slane %v817_v6, 4  ;;  %v778_v10 = vrot.slane %v777_v7, 4  ;;  %v705_v11 = vrot.slane %v704_v8, 4 }
 0x504   :  { %v741_v12 = vmax.f32 %v739_v5, %v740_v1  ;;  %v819_v13 = vmax.f32 %v817_v6, %v818_v9  ;;  %v779_v14 = vmax.f32 %v777_v7, %v778_v10  ;;  %v706_v15 = vmax.f32 %v704_v8, %v705_v11 }
 0x506   :  { %v742_v16 = vrot.slane %v741_v12, 2  ;;  %v820_v17 = vrot.slane %v819_v13, 2  ;;  %v780_v18 = vrot.slane %v779_v14, 2  ;;  %v707_v19 = vrot.slane %v706_v15, 2 }
 0x508   :  { %v743_v20 = vmax.f32 %v741_v12, %v742_v16  ;;  %v821_v21 = vmax.f32 %v819_v13, %v820_v17  ;;  %v781_v22 = vmax.f32 %v779_v14, %v780_v18  ;;  %v708_v23 = vmax.f32 %v706_v15, %v707_v19 }
 0x50a   :  { %v744_v24 = vrot.slane %v743_v20, 1  ;;  %v822_v25 = vrot.slane %v821_v21, 1  ;;  %v782_v26 = vrot.slane %v781_v22, 1  ;;  %v709_v30 = vrot.slane %v708_v23, 1 }
 0x50c   :  { %v745_v27 = vmax.f32 %v743_v20, %v744_v24  ;;  %v823_v28 = vmax.f32 %v821_v21, %v822_v25  ;;  %v783_v29 = vmax.f32 %v781_v22, %v782_v26  ;;  %v710_v37 = vmax.f32 %v708_v23, %v709_v30 }
 0x50e   :  { %v746_v31 = vsub.f32 %v1460_v4, %v745_v27  ;;  %v824_v32 = vsub.f32 %v1460_v4, %v823_v28  ;;  %v784_v33 = vsub.f32 %v1460_v4, %v783_v29  ;;  %v711_v38 = vsub.f32 %v1460_v4, %v710_v37 }
 0x510   :  { %v747_v34 = vmul.f32 1.442695, %v746_v31  ;;  %v825_v35 = vmul.f32 1.442695, %v824_v32  ;;  %v785_v36 = vmul.f32 1.442695, %v784_v33 }
 0x511   :  { %v712_v39 = vmul.f32 1.442695, %v711_v38 }
 0x512   :  { %1218 = vpow2.f32 %v747_v34 }
 0x513   :  { %1220 = vpow2.f32 %v825_v35 }
 0x514   :  { %1222 = vpow2.f32 %v785_v36 }
 0x515   :  { %1224 = vpow2.f32 %v712_v39 }
 0x51f   :  { %v1219_v40 = vpop.eup %1218 }
 0x520   :  { %v1221_v41 = vpop.eup %1220  ;;  %v749_v42 = vsel %vm738_vm7, %v1219_v40, 0.0 }
 0x521   :  { %v1223_v44 = vpop.eup %1222  ;;  %v750_v45 = vrot.slane %v749_v42, 4  ;;  %v828_v46 = vrot.slane %v1221_v41, 2 }
 0x522   :  { %v788_v47 = vrot.slane %v1223_v44, 2  ;;  %v1225_v60 = vpop.eup %1224 }
 0x523   :  { %v751_v48 = vadd.f32 %v750_v45, %v749_v42  ;;  %v830_v49 = vsel %vm738_vm7, %v828_v46, 0.0  ;;  %v714_v2 = vsel %vm703_vm9, %v1225_v60, 0.0 }
 0x524   :  { %v831_v50 = vrot.slane %v830_v49, 4  ;;  %v790_v51 = vsel %vm703_vm9, %v788_v47, 0.0  ;;  %v715_v6 = vrot.slane %v714_v2, 4 }
 0x525   :  { %v752_v52 = vrot.slane %v751_v48, 2  ;;  %v791_v53 = vrot.slane %v790_v51, 4 }
 0x526   :  { %v832_v54 = vadd.f32 %v831_v50, %v830_v49  ;;  %v716_v7 = vadd.f32 %v715_v6, %v714_v2 }
 0x527   :  { %v753_v55 = vadd.f32 %v752_v52, %v751_v48  ;;  %v792_v56 = vadd.f32 %v791_v53, %v790_v51 }
 0x528   :  { %v833_v57 = vrot.slane %v832_v54, 2  ;;  %v717_v8 = vrot.slane %v716_v7, 2 }
 0x529   :  { %v754_v58 = vrot.slane %v753_v55, 1  ;;  %v793_v59 = vrot.slane %v792_v56, 2 }
 0x52a   :  { %v834_v61 = vadd.f32 %v833_v57, %v832_v54  ;;  %v718_v10 = vadd.f32 %v717_v8, %v716_v7 }
 0x52b   :  { %v755_v62 = vadd.f32 %v754_v58, %v753_v55  ;;  %v794_v63 = vadd.f32 %v793_v59, %v792_v56 }
 0x52c   :  { %v835_v43 = vrot.slane %v834_v61, 1  ;;  %v719_v15 = vrot.slane %v718_v10, 1 }
 0x52d   :  { %1226 = vrcp.f32 %v755_v62  ;;  %v795_v0 = vrot.slane %v794_v63, 1 }
 0x52e   :  { %v836_v3 = vadd.f32 %v835_v43, %v834_v61  ;;  %v720_v18 = vadd.f32 %v719_v15, %v718_v10 }
 0x52f   :  { %v796_v5 = vadd.f32 %v795_v0, %v794_v63 }
 0x530   :  { %1228 = vrcp.f32 %v836_v3 }
 0x531   :  { %1230 = vlog2.f32 %v796_v5 }
 0x532   :  { %1232 = vlog2.f32 %v720_v18 }
 0x53a   :  { %v1227_v1 = vpop.eup %1226 }
 0x53b   :  { %v757_v9 = vmul.f32 %v1227_v1, %v1219_v40 }
 0x53d   :  { %v1229_v11 = vpop.eup %1228  ;;  %760 = vperm.xlu1 %1152, %v757_v9  }
 0x53e   :  { %v1231_v12 = vpop.eup %1230  ;;  %v838_v13 = vmul.f32 %v1229_v11, %v1221_v41 }
 0x53f   :  { %v798_v14 = vmul.f32 0.6931472, %v1231_v12  ;;  %v1233_v21 = vpop.eup %1232 }
 0x540   :  { %v722_v22 = vmul.f32 0.6931472, %v1233_v21 }
 0x541   :  { %841 = vperm.xlu1 %1152, %v838_v13   ;;  %v799_v16 = vadd.f32 %v798_v14, %v783_v29 }
 0x542   :  { %v723_v23 = vadd.f32 %v722_v22, %v710_v37 }
 0x543   :  { %v800_v17 = vsub.f32 %v799_v16, %v1460_v4  ;;  %v815_v29 = vsub.f32 %v1460_v4, %v799_v16 }
 0x544   :  { %v724_v24 = vsub.f32 %v723_v23, %v1460_v4  ;;  %v737_v26 = vsub.f32 %v1460_v4, %v723_v23 }
 0x545   :  { %v802_v19 = vrot.slane %v800_v17, 2 }
 0x546   :  { %v726_v25 = vsel %vm725_vm12, %v724_v24, 0.0 }
 0x547   :  { %v804_v20 = vsel %vm725_vm12, %v802_v19, 0.0 }
 0x548   :  { %805 = vadd.xlane.f32.xlu0 %v804_v20 }
 0x565   :  { %727 = vadd.xlane.f32.xlu1 %v726_v25 }
 0x5b8   :  { %v761_v27 = vpop.permute.xlu1 %760 }
 0x5b9   :  { %v763_v28 = vmul.f32 %v761_v27, %v737_v26 }
 0x5bb   :  { %v765_v30 = vsel %vm764_vm13, %v763_v28, 0.0 }
 0x5bc   :  { %v842_v31 = vpop.permute.xlu1 %841  ;;  %766 = vadd.xlane.f32.xlu0 %v765_v30 }
 0x5bd   :  { %v844_v32 = vmul.f32 %v842_v31, %v815_v29 }
 0x5bf   :  { %v846_v33 = vrot.slane %v844_v32, 2 }
 0x5c1   :  { %v848_v34 = vsel %vm764_vm13, %v846_v33, 0.0 }
 0x5c2   :  { %849 = vadd.xlane.f32.xlu0 %v848_v34 }
 0x5ee   :  { %v728_v35 = vpop.xlane.xlu1 %727 }
 0x5ef   :  { %v729_v36 = vrot.slane %v728_v35, 4 }
 0x5f1   :  { %v730_v37 = vadd.f32 %v729_v36, %v728_v35 }
 0x5f3   :  { %v731_v38 = vrot.slane %v730_v37, 2 }
 0x5f5   :  { %v732_v39 = vadd.f32 %v731_v38, %v730_v37 }
 0x5f7   :  { %v733_v40 = vrot.slane %v732_v39, 1 }
 0x5f9   :  { %v734_v41 = vadd.f32 %v733_v40, %v732_v39 }
 0x5fb   :  { %1137 = vpush %v734_v41 }
 0x5fc   :  { %1245 = shalt.err (!%p1242_p4)
}
 0x5fd   :  { %874 = dma.vmem_to_hbm [thread:$0]  %s872_s4, 64, %s1492_s5, [#allocation3]   ;;  %v806_v4 = vpop.xlane.xlu0 %805 }
 0x5fe   :  { %v807_v42 = vrot.slane %v806_v4, 4  ;;  %s1271_s14 = smov [#allocation5]  }
 0x600   :  { %v808_v44 = vadd.f32 %v807_v42, %v806_v4 }
 0x602   :  { %v809_v45 = vrot.slane %v808_v44, 2 }
 0x604   :  { %v810_v49 = vadd.f32 %v809_v45, %v808_v44 }
 0x606   :  { %v811_v54 = vrot.slane %v810_v49, 1 }
 0x608   :  { %v812_v59 = vadd.f32 %v811_v54, %v810_v49 }
 0x62c   :  { %s1138_s5 = spop %1137 }
 0x645   :  { %v767_v46 = vpop.xlane.xlu0 %766 }
 0x646   :  { %v768_v47 = vrot.slane %v767_v46, 4 }
 0x648   :  { %v769_v48 = vadd.f32 %v768_v47, %v767_v46 }
 0x64a   :  { %v770_v50 = vrot.slane %v769_v48, 2 }
 0x64b   :  { %v850_v51 = vpop.xlane.xlu0 %849 }
 0x64c   :  { %v851_v52 = vrot.slane %v850_v51, 4  ;;  %v771_v53 = vadd.f32 %v770_v50, %v769_v48 }
 0x64e   :  { %v852_v55 = vadd.f32 %v851_v52, %v850_v51  ;;  %v772_v56 = vrot.slane %v771_v53, 1 }
 0x650   :  { %v853_v57 = vrot.slane %v852_v55, 2  ;;  %v773_v58 = vadd.f32 %v772_v56, %v771_v53 }
 0x652   :  { %v854_v60 = vadd.f32 %v853_v57, %v852_v55  ;;  %1139 = vpush %v773_v58 }
 0x653   :  { %1141 = vpush %v812_v59 }
 0x654   :  { %v855_v61 = vrot.slane %v854_v60, 1 }
 0x656   :  { %v856_v62 = vadd.f32 %v855_v61, %v854_v60 }
 0x658   :  { %1143 = vpush %v856_v62 }
 0x683   :  { %s1140_s7 = spop %1139 }
 0x684   :  { %s1142_s8 = spop %1141  ;;  %s775_s0 = ssub.f32 0.0, %s1140_s7 }
 0x685   :  { %s814_s9 = sadd.f32 %s1142_s8, %s1138_s5 }
 0x689   :  { %s1144_s10 = spop %1143 }
 0x68a   :  { %s858_s11 = ssub.f32 %s775_s0, %s1144_s10 }
 0x68c   :  { %s859_s12 = sadd.f32 %s858_s11, %s814_s9 }
 0x68e   :  { %s862_s13 = smul.f32 0.5, %s859_s12 }
 0x690   :  { %864 = sst [smem:[#allocation5]] %s862_s13 }
 0x691   :  { %882 = dma.smem_to_hbm %s1271_s14, 16, %s1493_s6, [#allocation4]  }
 0x692   :  { %1262 = dma.done.wait [#allocation3], 64  }
 0x693   :  { %1263 = vsyncadd [#allocation3], 4294967232 }
 0x694   :  { %1264 = dma.done.wait [#allocation4], 16  }
 0x695   :  { %1265 = vsyncadd [#allocation4], 4294967280 }
 0x696   :  { %889 = sfence }
 0x697   :  { %890 = vsyncpa [#allocation3], 1 }
 0x698   :  { %891 = vsyncpa [#allocation4], 1 }

</bundles_post_ra>
